<compile_context>
chip_gen: v5e
topology: v5e:2x2
jax: 0.10.0
libtpu: 0.0.40
codegen_flags: <defaults>
</compile_context>

<pallas_src>
import functools

import jax
import jax.numpy as jnp
from jax.experimental import pallas as pl
from jax.experimental.pallas import tpu as pltpu

LANE = 128          # vreg lane width (last dim)
SUBLANE_BF16 = 16   # bf16 packs 2 rows per sublane -> 16-row granule


def _round_up(v, m):
    return ((v + m - 1) // m) * m


def _apply_activation(y, name):
    if name is None:
        return y
    if name == "relu":
        return jnp.maximum(y, 0.0)
    if name == "sigmoid":
        return jax.nn.sigmoid(y)
    if name == "tanh":
        return jnp.tanh(y)
    if name == "leaky_relu":
        return jnp.where(y >= 0.0, y, 0.01 * y)
    if name == "gelu":
        return jax.nn.gelu(y, approximate=False)   # torch.nn.GELU default (erf)
    raise NotImplementedError(f"Activation function {name} is not implemented.")


# ------------------------------ Pallas kernel --------------------------------


def fused_mlp_kernel(x_ref, *refs, activations, compute_dtype):
    """One batch tile through the whole MLP stack.

    refs = (w0, b0, w1, b1, ..., w_{L-1}, b_{L-1}, out_ref).
    Weights/activations are `compute_dtype` (bf16) on the MXU with f32
    accumulation; bias + activation (folded-BN epilogue) run in f32.
    """
    n_layers = len(activations)
    o_ref = refs[2 * n_layers]
    h = x_ref[...]
    for l in range(n_layers):
        w_ref = refs[2 * l]
        b_ref = refs[2 * l + 1]
        y = jnp.dot(h.astype(compute_dtype), w_ref[...],
                    preferred_element_type=jnp.float32)
        y = y + b_ref[...]                       # bias (+ folded BN shift), f32
        y = _apply_activation(y, activations[l])
        if l + 1 < n_layers:
            # Carry inter-layer activations in bf16: halves VMEM scratch and the
            # vld traffic feeding the next matmul (next dot casts to bf16 anyway).
            h = y.astype(compute_dtype)
        else:
            h = y
    o_ref[...] = h.astype(o_ref.dtype)


# ----------------------------- VMEM accounting --------------------------------


def _vmem_capacity_bytes():
    try:
        cap = int(pltpu.get_tpu_info().vmem_capacity_bytes)
        if cap > 0:
            return cap
    except Exception:
        pass
    return 64 * 1024 * 1024       # conservative fallback (v7x per-TC)


def _vmem_budget_bytes():
    # ~96-100 MiB on v5e/v6e (128 MiB VMEM), ~48 MiB on v7x (64 MiB/TC).
    return int(_vmem_capacity_bytes() * 3 // 4)


def _vmem_estimate_bytes(tm, pdims, compute_dtype, out_itemsize=4):
    it = jnp.dtype(compute_dtype).itemsize
    w = sum(pdims[l] * pdims[l + 1] for l in range(len(pdims) - 1)) * it
    b = sum(pdims[1:]) * 4
    x = tm * pdims[0] * 4
    o = tm * pdims[-1] * out_itemsize
    inter = 2 * tm * max(pdims) * 4          # inter-layer activation scratch
    # Weights/biases single-buffered (pl.Buffered(1)); x/out double-buffered.
    return (w + b) + 2 * (x + o) + inter


# --------------------------- parameter preparation ----------------------------


def _fold_bn(bn, n, eps=1e-5):
    """Fold eval-mode BatchNorm1d into per-feature (scale, shift)."""
    if bn is None:
        return jnp.ones((1, n), jnp.float32), jnp.zeros((1, n), jnp.float32)
    gamma, beta, r_mean, r_var = bn
    scale = gamma / jnp.sqrt(r_var + eps)
    shift = beta - r_mean * scale
    return scale, shift


def prepare_fused_mlp(params, activation, compute_dtype=jnp.bfloat16):
    """Fold eval-mode BN into the weights, fuse output heads into one wide
    matmul, pad all feature dims to 128 lanes and cast weights to bf16.

    Done ONCE per parameter set (hoisted out of the per-forward path); the
    returned prepared stack is reused by every fused_mlp_apply call.
    """
    ws, bs, acts = [], [], []
    for (w, b), bn in zip(params["linears"], params["bns"]):
        scale, shift = _fold_bn(bn, w.shape[1])
        ws.append(w * scale)             # column scaling folds BN into the matmul
        bs.append(b * scale + shift)
        acts.append(activation)          # dropout: identity in eval mode
    w_cat = jnp.concatenate([w for (w, _) in params["projs"]], axis=1)
    b_cat = jnp.concatenate([b for (_, b) in params["projs"]], axis=1)
    ws.append(w_cat)
    bs.append(b_cat)
    acts.append(None)                    # output heads: no BN / activation
    head_sizes = [int(w.shape[1]) for (w, _) in params["projs"]]

    dims = [int(ws[0].shape[0])] + [int(w.shape[1]) for w in ws]
    pdims = [_round_up(d, LANE) for d in dims]

    pws, pbs = [], []
    for l, (w, b) in enumerate(zip(ws, bs)):
        kl, nl = int(w.shape[0]), int(w.shape[1])
        wp = jnp.pad(w, ((0, pdims[l] - kl), (0, pdims[l + 1] - nl)))
        bp = jnp.pad(b.reshape(1, -1), ((0, 0), (0, pdims[l + 1] - nl)))
        pws.append(wp.astype(compute_dtype))
        pbs.append(bp.astype(jnp.float32))

    return dict(weights=pws, biases=pbs, activations=tuple(acts),
                dims=dims, pdims=pdims, head_sizes=head_sizes,
                compute_dtype=compute_dtype)


# ------------------------------ fused forward ---------------------------------


def _build_in_specs(tm, pdims, n_layers, single_buffer_resident):
    specs = [pl.BlockSpec((tm, pdims[0]), lambda i: (i, 0))]
    for l in range(n_layers):
        w_shape = (pdims[l], pdims[l + 1])
        b_shape = (1, pdims[l + 1])
        if single_buffer_resident:
            # Constant index_map -> block never changes; single buffer halves
            # the resident weight VMEM footprint.
            specs.append(pl.BlockSpec(w_shape, lambda i: (0, 0),
                                      pipeline_mode=pl.Buffered(1)))
            specs.append(pl.BlockSpec(b_shape, lambda i: (0, 0),
                                      pipeline_mode=pl.Buffered(1)))
        else:
            specs.append(pl.BlockSpec(w_shape, lambda i: (0, 0)))
            specs.append(pl.BlockSpec(b_shape, lambda i: (0, 0)))
    return specs


def fused_mlp_apply(prepared, x, *, out_dtype=jnp.float32, batch_tile=None):
    """x: (M, K0) f32.  Returns (M, N_total) f32 (fused heads, unsplit)."""
    compute_dtype = prepared["compute_dtype"]
    dims, pdims = prepared["dims"], prepared["pdims"]
    acts = prepared["activations"]
    n_layers = len(acts)
    M, K0 = x.shape
    assert K0 == dims[0], "input feature size mismatch"

    # --- batch tiling: bf16-sublane-aligned, >=2 grid steps when possible ----
    granule = SUBLANE_BF16
    if batch_tile is None:
        batch_tile = 512                         # sweep 256-1024 for your shapes
    tm = max(granule, min(_round_up(batch_tile, granule), _round_up(M, granule)))
    if _round_up(M, granule) <= tm and M >= 2 * granule:
        # Split a single-tile batch so both v7x TensorCores get a grid step.
        tm = _round_up(pl.cdiv(M, 2), granule)
    Mp = _round_up(M, tm)
    n_tiles = Mp // tm

    # --- generation-aware VMEM guard / limit ---------------------------------
    budget = _vmem_budget_bytes()
    est = _vmem_estimate_bytes(tm, pdims, compute_dtype,
                               jnp.dtype(out_dtype).itemsize)
    assert est < budget, (
        f"weight stack too large for VMEM-resident fused MLP "
        f"(estimate {est} B >= budget {budget} B)"
    )  # TODO(synk): per-layer K/N-tiled accumulator fallback for huge layers.

    # --- input: avoid the HBM pad/cast round-trip when already aligned -------
    need_pad = (Mp != M) or (pdims[0] != K0)
    if need_pad:
        xp = jnp.pad(x, ((0, Mp - M), (0, pdims[0] - K0))).astype(compute_dtype)
    else:
        xp = x          # passed straight through; bf16 cast happens in-kernel

    args = [xp] + [r for l in range(n_layers)
                   for r in (prepared["weights"][l], prepared["biases"][l])]

    flops = 2 * Mp * sum(pdims[l] * pdims[l + 1] for l in range(n_layers))
    transcendental_acts = ("sigmoid", "tanh", "gelu")
    transc = Mp * sum(pdims[l + 1] for l in range(n_layers)
                      if acts[l] in transcendental_acts)
    bytes_accessed = (xp.size * xp.dtype.itemsize
                      + sum(w.size * w.dtype.itemsize for w in prepared["weights"])
                      + sum(b.size * b.dtype.itemsize for b in prepared["biases"])
                      + Mp * pdims[-1] * jnp.dtype(out_dtype).itemsize)

    kernel = functools.partial(fused_mlp_kernel,
                               activations=acts,
                               compute_dtype=compute_dtype)

    def run(single_buffer_resident):
        return pl.pallas_call(
            kernel,
            out_shape=jax.ShapeDtypeStruct((Mp, pdims[-1]), out_dtype),
            grid=(n_tiles,),
            in_specs=_build_in_specs(tm, pdims, n_layers, single_buffer_resident),
            out_specs=pl.BlockSpec((tm, pdims[-1]), lambda i: (i, 0)),
            compiler_params=pltpu.CompilerParams(
                dimension_semantics=("parallel",),   # batch tiles -> megacore
                vmem_limit_bytes=budget,
            ),
            cost_estimate=pl.CostEstimate(flops=int(flops),
                                          transcendentals=int(transc),
                                          bytes_accessed=int(bytes_accessed)),
        )(*args)

    try:
        out = run(True)
    except Exception:
        # TODO(synk): pl.Buffered(1) not supported by this jax version/backend;
        # fall back to default double-buffered resident weights.
        out = run(False)

    return out[:M, :dims[-1]]


def _split_heads(y, head_sizes):
    outs, off = [], 0
    for n in head_sizes:
        outs.append(y[:, off:off + n])
        off += n
    return tuple(outs) if len(outs) > 1 else outs[0]


def mlp_forward(prepared, x):
    """Forward pass matching MLP.forward (eval mode) on prepared weights."""
    y = fused_mlp_apply(prepared, x)
    return _split_heads(y, prepared["head_sizes"])


def mlp_forward_ref(prepared, x):
    """Pure-JAX reference at matched precision (bf16 matmul, f32 epilogue)."""
    compute_dtype = prepared["compute_dtype"]
    dims = prepared["dims"]
    h = x
    for l, act in enumerate(prepared["activations"]):
        w = prepared["weights"][l][:dims[l], :dims[l + 1]]
        b = prepared["biases"][l][:, :dims[l + 1]]
        y = jnp.dot(h.astype(compute_dtype), w,
                    preferred_element_type=jnp.float32) + b
        h = _apply_activation(y, act)
    return _split_heads(h, prepared["head_sizes"])


# --------------------------- parameter handling ------------------------------


def init_mlp_params(key, input_size, hidden_sizes, output_sizes, batch_norm):
    """Deterministic init mirroring the shapes in MLP.__init__."""
    params = {"linears": [], "bns": [], "projs": []}
    sizes = [input_size] + list(hidden_sizes)
    for i in range(len(hidden_sizes)):
        fan_in, fan_out = sizes[i], sizes[i + 1]
        key, kw, kb = jax.random.split(key, 3)
        bound = 1.0 / jnp.sqrt(fan_in)
        # PyTorch stores (out, in); keep (in, out) for x @ W.
        w = jax.random.uniform(kw, (fan_in, fan_out), jnp.float32, -bound, bound)
        b = jax.random.uniform(kb, (1, fan_out), jnp.float32, -bound, bound)
        params["linears"].append((w, b))
        if batch_norm:
            key, kg, kbeta, km, kv = jax.random.split(key, 5)
            gamma = jax.random.uniform(kg, (1, fan_out), jnp.float32, 0.5, 1.5)
            beta = jax.random.uniform(kbeta, (1, fan_out), jnp.float32, -0.5, 0.5)
            r_mean = jax.random.uniform(km, (1, fan_out), jnp.float32, -0.5, 0.5)
            r_var = jax.random.uniform(kv, (1, fan_out), jnp.float32, 0.5, 1.5)
            params["bns"].append((gamma, beta, r_mean, r_var))
        else:
            params["bns"].append(None)
    for out_sz in output_sizes:
        fan_in = hidden_sizes[-1]
        key, kw, kb = jax.random.split(key, 3)
        bound = 1.0 / jnp.sqrt(fan_in)
        w = jax.random.uniform(kw, (fan_in, out_sz), jnp.float32, -bound, bound)
        b = jax.random.uniform(kb, (1, out_sz), jnp.float32, -bound, bound)
        params["projs"].append((w, b))
    return params


# ---------------------------------- main --------------------------------------


if __name__ == "__main__":
    key = jax.random.PRNGKey(0)

    # --- test 1: single output head (returns a single tensor) ----------------
    batch, input_size = 8, 16
    hidden_sizes, output_sizes = [32, 32], [8]
    key, kx, kp = jax.random.split(key, 3)
    x = jax.random.normal(kx, (batch, input_size), jnp.float32)
    params = init_mlp_params(kp, input_size, hidden_sizes, output_sizes,
                             batch_norm=True)
    prep = prepare_fused_mlp(params, "relu")          # prepared ONCE, reused
    out = jax.block_until_ready(mlp_forward(prep, x))
    ref = mlp_forward_ref(prep, x)
    assert out.shape == (batch, output_sizes[0])
    assert jnp.allclose(out, ref, atol=1e-3, rtol=1e-3), "mismatch (test 1)"

    # --- test 2: two output heads (returns a tuple), ragged tiny batch -------
    hidden_sizes2, output_sizes2 = [64, 32], [8, 4]
    key, kx2, kp2 = jax.random.split(key, 3)
    x2 = jax.random.normal(kx2, (5, input_size), jnp.float32)
    params2 = init_mlp_params(kp2, input_size, hidden_sizes2, output_sizes2,
                              batch_norm=True)
    prep2 = prepare_fused_mlp(params2, "tanh")
    out2 = jax.block_until_ready(mlp_forward(prep2, x2))
    ref2 = mlp_forward_ref(prep2, x2)
    assert isinstance(out2, tuple) and len(out2) == 2
    assert out2[0].shape == (5, 8) and out2[1].shape == (5, 4)
    for o, r in zip(out2, ref2):
        assert jnp.allclose(o, r, atol=1e-3, rtol=1e-3), "mismatch (test 2)"

    # --- test 3: lane/tile-aligned shapes -> no-pad fast path, 2 grid steps --
    batch3, input_size3 = 256, 128
    hidden_sizes3, output_sizes3 = [128, 128], [8]
    key, kx3, kp3 = jax.random.split(key, 3)
    x3 = jax.random.normal(kx3, (batch3, input_size3), jnp.float32)
    params3 = init_mlp_params(kp3, input_size3, hidden_sizes3, output_sizes3,
                              batch_norm=True)
    prep3 = prepare_fused_mlp(params3, "relu")
    out3 = jax.block_until_ready(mlp_forward(prep3, x3))
    ref3 = mlp_forward_ref(prep3, x3)
    assert out3.shape == (batch3, output_sizes3[0])
    assert jnp.allclose(out3, ref3, atol=1e-3, rtol=1e-3), "mismatch (test 3)"

    print("KERNEL_OK")
</pallas_src>

<mosaic_0001>
module attributes {stable_mosaic.version = 11 : i64} {
  func.func @fused_mlp_kernel(%arg0: i32, %arg1: memref<16x128xbf16, #tpu.memory_space<vmem>>, %arg2: memref<128x128xbf16, #tpu.memory_space<vmem>>, %arg3: memref<1x128xf32, #tpu.memory_space<vmem>>, %arg4: memref<128x128xbf16, #tpu.memory_space<vmem>>, %arg5: memref<1x128xf32, #tpu.memory_space<vmem>>, %arg6: memref<128x128xbf16, #tpu.memory_space<vmem>>, %arg7: memref<1x128xf32, #tpu.memory_space<vmem>>, %arg8: memref<16x128xf32, #tpu.memory_space<vmem>>) attributes {dimension_semantics = [#tpu.dimension_semantics<parallel>], iteration_bounds = array<i64: 1>, scalar_prefetch = 0 : i64, scratch_operands = 0 : i64, tpu.core_type = #tpu.core_type<tc>, window_params = [{transform_indices = @transform_0, window_bounds = array<i64: 16, 128>}, {pipeline_mode = #tpu.pipeline_mode<synchronous>, transform_indices = @transform_1, window_bounds = array<i64: 128, 128>}, {pipeline_mode = #tpu.pipeline_mode<synchronous>, transform_indices = @transform_2, window_bounds = array<i64: 1, 128>}, {pipeline_mode = #tpu.pipeline_mode<synchronous>, transform_indices = @transform_3, window_bounds = array<i64: 128, 128>}, {pipeline_mode = #tpu.pipeline_mode<synchronous>, transform_indices = @transform_4, window_bounds = array<i64: 1, 128>}, {pipeline_mode = #tpu.pipeline_mode<synchronous>, transform_indices = @transform_5, window_bounds = array<i64: 128, 128>}, {pipeline_mode = #tpu.pipeline_mode<synchronous>, transform_indices = @transform_6, window_bounds = array<i64: 1, 128>}, {transform_indices = @transform_7, window_bounds = array<i64: 16, 128>}]} {
    %c0 = arith.constant 0 : index
    %c0_0 = arith.constant 0 : index
    %0 = vector.load %arg1[%c0, %c0_0] : memref<16x128xbf16, #tpu.memory_space<vmem>>, vector<16x128xbf16>
    %c0_1 = arith.constant 0 : index
    %c0_2 = arith.constant 0 : index
    %1 = vector.load %arg2[%c0_1, %c0_2] : memref<128x128xbf16, #tpu.memory_space<vmem>>, vector<128x128xbf16>
    %cst = arith.constant dense<0.000000e+00> : vector<16x128xf32>
    %2 = tpu.matmul %0, %1, %cst {dimension_numbers = #tpu.dot_dimension_numbers<[1], [0], [0], [1], [0, 0, 1, 1], [], []>} : vector<16x128xbf16>, vector<128x128xbf16>, vector<16x128xf32> -> vector<16x128xf32>
    %c0_3 = arith.constant 0 : index
    %c0_4 = arith.constant 0 : index
    %3 = vector.load %arg3[%c0_3, %c0_4] : memref<1x128xf32, #tpu.memory_space<vmem>>, vector<1x128xf32>
    %4 = vector.broadcast %3 : vector<1x128xf32> to vector<16x128xf32>
    %5 = arith.addf %2, %4 : vector<16x128xf32>
    %cst_5 = arith.constant 0.000000e+00 : f32
    %6 = vector.broadcast %cst_5 : f32 to vector<16x128xf32>
    %7 = arith.maximumf %5, %6 : vector<16x128xf32>
    %8 = arith.truncf %7 : vector<16x128xf32> to vector<16x128xbf16>
    %c0_6 = arith.constant 0 : index
    %c0_7 = arith.constant 0 : index
    %9 = vector.load %arg4[%c0_6, %c0_7] : memref<128x128xbf16, #tpu.memory_space<vmem>>, vector<128x128xbf16>
    %cst_8 = arith.constant dense<0.000000e+00> : vector<16x128xf32>
    %10 = tpu.matmul %8, %9, %cst_8 {dimension_numbers = #tpu.dot_dimension_numbers<[1], [0], [0], [1], [0, 0, 1, 1], [], []>} : vector<16x128xbf16>, vector<128x128xbf16>, vector<16x128xf32> -> vector<16x128xf32>
    %c0_9 = arith.constant 0 : index
    %c0_10 = arith.constant 0 : index
    %11 = vector.load %arg5[%c0_9, %c0_10] : memref<1x128xf32, #tpu.memory_space<vmem>>, vector<1x128xf32>
    %12 = vector.broadcast %11 : vector<1x128xf32> to vector<16x128xf32>
    %13 = arith.addf %10, %12 : vector<16x128xf32>
    %cst_11 = arith.constant 0.000000e+00 : f32
    %14 = vector.broadcast %cst_11 : f32 to vector<16x128xf32>
    %15 = arith.maximumf %13, %14 : vector<16x128xf32>
    %16 = arith.truncf %15 : vector<16x128xf32> to vector<16x128xbf16>
    %c0_12 = arith.constant 0 : index
    %c0_13 = arith.constant 0 : index
    %17 = vector.load %arg6[%c0_12, %c0_13] : memref<128x128xbf16, #tpu.memory_space<vmem>>, vector<128x128xbf16>
    %cst_14 = arith.constant dense<0.000000e+00> : vector<16x128xf32>
    %18 = tpu.matmul %16, %17, %cst_14 {dimension_numbers = #tpu.dot_dimension_numbers<[1], [0], [0], [1], [0, 0, 1, 1], [], []>} : vector<16x128xbf16>, vector<128x128xbf16>, vector<16x128xf32> -> vector<16x128xf32>
    %c0_15 = arith.constant 0 : index
    %c0_16 = arith.constant 0 : index
    %19 = vector.load %arg7[%c0_15, %c0_16] : memref<1x128xf32, #tpu.memory_space<vmem>>, vector<1x128xf32>
    %20 = vector.broadcast %19 : vector<1x128xf32> to vector<16x128xf32>
    %21 = arith.addf %18, %20 : vector<16x128xf32>
    %c0_17 = arith.constant 0 : index
    %c0_18 = arith.constant 0 : index
    %22 = vector.load %arg8[%c0_17, %c0_18] : memref<16x128xf32, #tpu.memory_space<vmem>>, vector<16x128xf32>
    tpu.vector_store %arg8[%c0_17, %c0_18], %21 {strides = array<i32>} : memref<16x128xf32, #tpu.memory_space<vmem>>, vector<16x128xf32>,
    return
  }
  func.func @transform_0(%arg0: i32) -> (i32, i32) {
    %c0_i32 = arith.constant 0 : i32
    %c0_i32_0 = arith.constant 0 : i32
    return %arg0, %c0_i32 : i32, i32
  }
  func.func @transform_1(%arg0: i32) -> (i32, i32) {
    %c0_i32 = arith.constant 0 : i32
    %c0_i32_0 = arith.constant 0 : i32
    %c0_i32_1 = arith.constant 0 : i32
    return %c0_i32, %c0_i32_0 : i32, i32
  }
  func.func @transform_2(%arg0: i32) -> (i32, i32) {
    %c0_i32 = arith.constant 0 : i32
    %c0_i32_0 = arith.constant 0 : i32
    %c0_i32_1 = arith.constant 0 : i32
    return %c0_i32, %c0_i32_0 : i32, i32
  }
  func.func @transform_3(%arg0: i32) -> (i32, i32) {
    %c0_i32 = arith.constant 0 : i32
    %c0_i32_0 = arith.constant 0 : i32
    %c0_i32_1 = arith.constant 0 : i32
    return %c0_i32, %c0_i32_0 : i32, i32
  }
  func.func @transform_4(%arg0: i32) -> (i32, i32) {
    %c0_i32 = arith.constant 0 : i32
    %c0_i32_0 = arith.constant 0 : i32
    %c0_i32_1 = arith.constant 0 : i32
    return %c0_i32, %c0_i32_0 : i32, i32
  }
  func.func @transform_5(%arg0: i32) -> (i32, i32) {
    %c0_i32 = arith.constant 0 : i32
    %c0_i32_0 = arith.constant 0 : i32
    %c0_i32_1 = arith.constant 0 : i32
    return %c0_i32, %c0_i32_0 : i32, i32
  }
  func.func @transform_6(%arg0: i32) -> (i32, i32) {
    %c0_i32 = arith.constant 0 : i32
    %c0_i32_0 = arith.constant 0 : i32
    %c0_i32_1 = arith.constant 0 : i32
    return %c0_i32, %c0_i32_0 : i32, i32
  }
  func.func @transform_7(%arg0: i32) -> (i32, i32) {
    %c0_i32 = arith.constant 0 : i32
    %c0_i32_0 = arith.constant 0 : i32
    return %arg0, %c0_i32 : i32, i32
  }
}

module attributes {stable_mosaic.version = 11 : i64} {
  func.func @fused_mlp_kernel(%arg0: i32, %arg1: memref<16x128xbf16, #tpu.memory_space<vmem>>, %arg2: memref<128x128xbf16, #tpu.memory_space<vmem>>, %arg3: memref<1x128xf32, #tpu.memory_space<vmem>>, %arg4: memref<128x128xbf16, #tpu.memory_space<vmem>>, %arg5: memref<1x128xf32, #tpu.memory_space<vmem>>, %arg6: memref<128x128xbf16, #tpu.memory_space<vmem>>, %arg7: memref<1x128xf32, #tpu.memory_space<vmem>>, %arg8: memref<16x128xf32, #tpu.memory_space<vmem>>) attributes {dimension_semantics = [#tpu.dimension_semantics<parallel>], iteration_bounds = array<i64: 1>, scalar_prefetch = 0 : i64, scratch_operands = 0 : i64, tpu.core_type = #tpu.core_type<tc>, window_params = [{transform_indices = @transform_0, window_bounds = array<i64: 16, 128>}, {pipeline_mode = #tpu.pipeline_mode<synchronous>, transform_indices = @transform_1, window_bounds = array<i64: 128, 128>}, {pipeline_mode = #tpu.pipeline_mode<synchronous>, transform_indices = @transform_2, window_bounds = array<i64: 1, 128>}, {pipeline_mode = #tpu.pipeline_mode<synchronous>, transform_indices = @transform_3, window_bounds = array<i64: 128, 128>}, {pipeline_mode = #tpu.pipeline_mode<synchronous>, transform_indices = @transform_4, window_bounds = array<i64: 1, 128>}, {pipeline_mode = #tpu.pipeline_mode<synchronous>, transform_indices = @transform_5, window_bounds = array<i64: 128, 128>}, {pipeline_mode = #tpu.pipeline_mode<synchronous>, transform_indices = @transform_6, window_bounds = array<i64: 1, 128>}, {transform_indices = @transform_7, window_bounds = array<i64: 16, 128>}]} {
    %c0 = arith.constant 0 : index
    %c0_0 = arith.constant 0 : index
    %0 = vector.load %arg1[%c0, %c0_0] : memref<16x128xbf16, #tpu.memory_space<vmem>>, vector<16x128xbf16>
    %c0_1 = arith.constant 0 : index
    %c0_2 = arith.constant 0 : index
    %1 = vector.load %arg2[%c0_1, %c0_2] : memref<128x128xbf16, #tpu.memory_space<vmem>>, vector<128x128xbf16>
    %cst = arith.constant dense<0.000000e+00> : vector<16x128xf32>
    %2 = tpu.matmul %0, %1, %cst {dimension_numbers = #tpu.dot_dimension_numbers<[1], [0], [0], [1], [0, 0, 1, 1], [], []>} : vector<16x128xbf16>, vector<128x128xbf16>, vector<16x128xf32> -> vector<16x128xf32>
    %c0_3 = arith.constant 0 : index
    %c0_4 = arith.constant 0 : index
    %3 = vector.load %arg3[%c0_3, %c0_4] : memref<1x128xf32, #tpu.memory_space<vmem>>, vector<1x128xf32>
    %4 = vector.broadcast %3 : vector<1x128xf32> to vector<16x128xf32>
    %5 = arith.addf %2, %4 : vector<16x128xf32>
    %cst_5 = arith.constant 0.000000e+00 : f32
    %6 = vector.broadcast %cst_5 : f32 to vector<16x128xf32>
    %7 = arith.maximumf %5, %6 : vector<16x128xf32>
    %8 = arith.truncf %7 : vector<16x128xf32> to vector<16x128xbf16>
    %c0_6 = arith.constant 0 : index
    %c0_7 = arith.constant 0 : index
    %9 = vector.load %arg4[%c0_6, %c0_7] : memref<128x128xbf16, #tpu.memory_space<vmem>>, vector<128x128xbf16>
    %cst_8 = arith.constant dense<0.000000e+00> : vector<16x128xf32>
    %10 = tpu.matmul %8, %9, %cst_8 {dimension_numbers = #tpu.dot_dimension_numbers<[1], [0], [0], [1], [0, 0, 1, 1], [], []>} : vector<16x128xbf16>, vector<128x128xbf16>, vector<16x128xf32> -> vector<16x128xf32>
    %c0_9 = arith.constant 0 : index
    %c0_10 = arith.constant 0 : index
    %11 = vector.load %arg5[%c0_9, %c0_10] : memref<1x128xf32, #tpu.memory_space<vmem>>, vector<1x128xf32>
    %12 = vector.broadcast %11 : vector<1x128xf32> to vector<16x128xf32>
    %13 = arith.addf %10, %12 : vector<16x128xf32>
    %cst_11 = arith.constant 0.000000e+00 : f32
    %14 = vector.broadcast %cst_11 : f32 to vector<16x128xf32>
    %15 = arith.maximumf %13, %14 : vector<16x128xf32>
    %16 = arith.truncf %15 : vector<16x128xf32> to vector<16x128xbf16>
    %c0_12 = arith.constant 0 : index
    %c0_13 = arith.constant 0 : index
    %17 = vector.load %arg6[%c0_12, %c0_13] : memref<128x128xbf16, #tpu.memory_space<vmem>>, vector<128x128xbf16>
    %cst_14 = arith.constant dense<0.000000e+00> : vector<16x128xf32>
    %18 = tpu.matmul %16, %17, %cst_14 {dimension_numbers = #tpu.dot_dimension_numbers<[1], [0], [0], [1], [0, 0, 1, 1], [], []>} : vector<16x128xbf16>, vector<128x128xbf16>, vector<16x128xf32> -> vector<16x128xf32>
    %c0_15 = arith.constant 0 : index
    %c0_16 = arith.constant 0 : index
    %19 = vector.load %arg7[%c0_15, %c0_16] : memref<1x128xf32, #tpu.memory_space<vmem>>, vector<1x128xf32>
    %20 = vector.broadcast %19 : vector<1x128xf32> to vector<16x128xf32>
    %21 = arith.addf %18, %20 : vector<16x128xf32>
    %c0_17 = arith.constant 0 : index
    %c0_18 = arith.constant 0 : index
    %22 = vector.load %arg8[%c0_17, %c0_18] : memref<16x128xf32, #tpu.memory_space<vmem>>, vector<16x128xf32>
    tpu.vector_store %arg8[%c0_17, %c0_18], %21 {strides = array<i32>} : memref<16x128xf32, #tpu.memory_space<vmem>>, vector<16x128xf32>,
    return
  }
  func.func @transform_0(%arg0: i32) -> (i32, i32) {
    %c0_i32 = arith.constant 0 : i32
    %c0_i32_0 = arith.constant 0 : i32
    return %arg0, %c0_i32 : i32, i32
  }
  func.func @transform_1(%arg0: i32) -> (i32, i32) {
    %c0_i32 = arith.constant 0 : i32
    %c0_i32_0 = arith.constant 0 : i32
    %c0_i32_1 = arith.constant 0 : i32
    return %c0_i32, %c0_i32_0 : i32, i32
  }
  func.func @transform_2(%arg0: i32) -> (i32, i32) {
    %c0_i32 = arith.constant 0 : i32
    %c0_i32_0 = arith.constant 0 : i32
    %c0_i32_1 = arith.constant 0 : i32
    return %c0_i32, %c0_i32_0 : i32, i32
  }
  func.func @transform_3(%arg0: i32) -> (i32, i32) {
    %c0_i32 = arith.constant 0 : i32
    %c0_i32_0 = arith.constant 0 : i32
    %c0_i32_1 = arith.constant 0 : i32
    return %c0_i32, %c0_i32_0 : i32, i32
  }
  func.func @transform_4(%arg0: i32) -> (i32, i32) {
    %c0_i32 = arith.constant 0 : i32
    %c0_i32_0 = arith.constant 0 : i32
    %c0_i32_1 = arith.constant 0 : i32
    return %c0_i32, %c0_i32_0 : i32, i32
  }
  func.func @transform_5(%arg0: i32) -> (i32, i32) {
    %c0_i32 = arith.constant 0 : i32
    %c0_i32_0 = arith.constant 0 : i32
    %c0_i32_1 = arith.constant 0 : i32
    return %c0_i32, %c0_i32_0 : i32, i32
  }
  func.func @transform_6(%arg0: i32) -> (i32, i32) {
    %c0_i32 = arith.constant 0 : i32
    %c0_i32_0 = arith.constant 0 : i32
    %c0_i32_1 = arith.constant 0 : i32
    return %c0_i32, %c0_i32_0 : i32, i32
  }
  func.func @transform_7(%arg0: i32) -> (i32, i32) {
    %c0_i32 = arith.constant 0 : i32
    %c0_i32_0 = arith.constant 0 : i32
    return %arg0, %c0_i32 : i32, i32
  }
}

</mosaic_0001>

<bundles_post_ra>
// kernel: tpu_custom_call.1
= control target key start
LH: loop header
LB: loop body
LE: loop exit
PB: predicated region body
PF: predicated region fallthrough
CT: control target
= control target key end

     0   :  { %12 = vsyncpa [#allocation3], 0  ;;  %s711_s0 = inlined_call_operand.hbm [shape: bf16[16,128], index: 0, kind: input, shape index: {}]   ;;  %s712_s1 = inlined_call_operand.hbm [shape: bf16[128,128], index: 1, kind: input, shape index: {}]   ;;  %s713_s2 = inlined_call_operand.vmem [shape: f32[1,128], index: 2, kind: input, shape index: {}]   ;;  %s714_s3 = inlined_call_operand.hbm [shape: bf16[128,128], index: 3, kind: input, shape index: {}]   ;;  %s715_s4 = inlined_call_operand.vmem [shape: f32[1,128], index: 4, kind: input, shape index: {}]   ;;  %s716_s5 = inlined_call_operand.hbm [shape: bf16[128,128], index: 5, kind: input, shape index: {}]   ;;  %s717_s6 = inlined_call_operand.vmem [shape: f32[1,128], index: 6, kind: input, shape index: {}]   ;;  %s718_s7 = inlined_call_operand.hbm [shape: f32[16,128], index: 7, kind: output, shape index: {}]  }
   0x1   :  { %13 = vsyncpa [#allocation6], 0 }
   0x2   :  { %14 = vsyncpa [#allocation9], 0 }
   0x3   :  { %15 = vsyncpa [#allocation4], 0  ;;  %s33_s26 = sshll.u32 %s712_s1, 4  ;;  %s638_s27 = smov [#allocation5]   ;;  %s34_s26 = int_to_ptr.hbm [resolvable:$true] %s33_s26 }
   0x4   :  { %s35_s28 = sshll.u32 %s638_s27, 4  ;;  %s20_s8 = sshll.u32 %s711_s0, 4  ;;  %s36_s28 = int_to_ptr.vmem [resolvable:$true] %s35_s28  ;;  %s21_s8 = int_to_ptr.hbm [resolvable:$true] %s20_s8 }
   0x5   :  { %s639_s9 = smov 64   ;;  %s640_s10 = smov 4  }
   0x6   :  { %41 = dma.hbm_to_vmem [thread:$0]  %s34_s26, 1024, %s36_s28, [#allocation6], %s639_s9, %s639_s9, %s640_s10  }
   0x7   :  { %s641_s11 = smov [#allocation2]   ;;  %s48_s15 = sshll.u32 %s714_s3, 4  ;;  %s49_s15 = int_to_ptr.hbm [resolvable:$true] %s48_s15 }
   0x8   :  { %s22_s12 = sshll.u32 %s641_s11, 4  ;;  %s63_s17 = sshll.u32 %s716_s5, 4  ;;  %s23_s12 = int_to_ptr.vmem [resolvable:$true] %s22_s12  ;;  %s64_s17 = int_to_ptr.hbm [resolvable:$true] %s63_s17 }
   0x9   :  { %28 = dma.hbm_to_vmem [thread:$0]  %s21_s8, 128, %s23_s12, [#allocation3], %s639_s9, %s639_s9, %s640_s10  }
   0xa   :  { %s642_s18 = smov [#allocation7]   ;;  %s643_s0 = smov [#allocation8]  }
   0xb   :  { %s50_s19 = sshll.u32 %s642_s18, 4  ;;  %s65_s20 = sshll.u32 %s643_s0, 4  ;;  %s51_s19 = int_to_ptr.vmem [resolvable:$true] %s50_s19  ;;  %s66_s20 = int_to_ptr.vmem [resolvable:$true] %s65_s20 }
   0xc   :  { %56 = dma.hbm_to_vmem [thread:$0]  %s49_s15, 1024, %s51_s19, [#allocation6], %s639_s9, %s639_s9, %s640_s10  }
   0xd   :  { %71 = dma.hbm_to_vmem [thread:$0]  %s64_s17, 1024, %s66_s20, [#allocation9], %s639_s9, %s639_s9, %s640_s10  }
   0xe   :  { %630 = dma.done.wait [#allocation3], 128  }
   0xf   :  { %631 = vsyncadd [#allocation3], 4294967168 }
  0x10   :  { %632 = dma.done.wait [#allocation6], 2048  }
  0x11   :  { %633 = vsyncadd [#allocation6], 4294965248 }
  0x12   :  { %634 = dma.done.wait [#allocation9], 1024  }
  0x13   :  { %635 = vsyncadd [#allocation9], 4294966272  ;;  %v481_v0 = vld [vmem:[#allocation5 + $0x38] sm:$0xff]  ;;  %v480_v1 = vld [vmem:[#allocation5 + $0x30] sm:$0xff]  ;;  %s644_s24 = smov [#allocation10]   ;;  %s645_s28 = smov 128  }
  0x14   :  { %166 = vmatpush.bf16.msra.mxu0 %v481_v0  ;;  %v489_v2 = vld [vmem:[#allocation7 + $0x38] sm:$0xff]  ;;  %v488_v3 = vld [vmem:[#allocation7 + $0x30] sm:$0xff]  ;;  %v479_v4 = vld [vmem:[#allocation5 + $0x28] sm:$0xff]  ;;  %s356_s25 = sshll.u32 %s644_s24, 4  ;;  %s646_s29 = smov 8   ;;  %s357_s25 = int_to_ptr.vmem [resolvable:$true] %s356_s25 }
  0x15   :  { %251 = vmatpush.bf16.msra.mxu1 %v489_v2  ;;  %v487_v5 = vld [vmem:[#allocation7 + $0x28] sm:$0xff]  ;;  %v478_v6 = vld [vmem:[#allocation5 + $0x20] sm:$0xff]  ;;  %v477_v8 = vld [vmem:[#allocation5 + $0x18] sm:$0xff] }
  0x16   :  { %v486_v7 = vld [vmem:[#allocation7 + $0x20] sm:$0xff]  ;;  %v476_v9 = vld [vmem:[#allocation5 + $0x10] sm:$0xff]  ;;  %v475_v10 = vld [vmem:[#allocation5 + $0x8] sm:$0xff] }
  0x17   :  { %v474_v11 = vld [vmem:[#allocation5] sm:$0xff]  ;;  %v473_v12 = vld [vmem:[#allocation2] sm:$0xff]  ;;  %v484_v14 = vld [vmem:[#allocation7 + $0x10] sm:$0xff] }
  0x18   :  { %167 = vmatpush.bf16.msra.mxu0 %v480_v1  ;;  %v485_v13 = vld [vmem:[#allocation7 + $0x18] sm:$0xff]  ;;  %v483_v15 = vld [vmem:[#allocation7 + $0x8] sm:$0xff]  ;;  %v482_v16 = vld [vmem:[#allocation7] sm:$0xff] }
  0x19   :  { %252 = vmatpush.bf16.msra.mxu1 %v488_v3  ;;  %v497_v17 = vld [vmem:[#allocation8 + $0x38] sm:$0xff]  ;;  %v496_v18 = vld [vmem:[#allocation8 + $0x30] sm:$0xff]  ;;  %v495_v19 = vld [vmem:[#allocation8 + $0x28] sm:$0xff] }
  0x1a   :  { %336 = vmatpush.bf16.msra.mxu2 %v497_v17  ;;  %v494_v20 = vld [vmem:[#allocation8 + $0x20] sm:$0xff]  ;;  %v507_v22 = vld [vmem:[%s713_s2] ss:$0 sm:$0xff]  ;;  %v492_v30 = vld [vmem:[#allocation8 + $0x10] sm:$0xff] }
  0x1b   :  { %v493_v29 = vld [vmem:[#allocation8 + $0x18] sm:$0xff]  ;;  %v491_v31 = vld [vmem:[#allocation8 + $0x8] sm:$0xff]  ;;  %v490_v32 = vld [vmem:[#allocation8] sm:$0xff] }
  0x1c   :  { %168 = vmatpush.bf16.msra.mxu0 %v479_v4  ;;  %v508_v34 = vld [vmem:[%s715_s4] ss:$0 sm:$0xff]  ;;  %s358_s4 = sshll.u32 %s718_s7, 4  ;;  %s359_s4 = int_to_ptr.hbm [resolvable:$true] %s358_s4 }
  0x1d   :  { %253 = vmatpush.bf16.msra.mxu1 %v487_v5  ;;  %v509_v41 = vld [vmem:[%s717_s6] ss:$0 sm:$0xff] }
  0x1e   :  { %337 = vmatpush.bf16.msra.mxu2 %v496_v18 }
  0x20   :  { %169 = vmatpush.bf16.msra.mxu0 %v478_v6 }
  0x21   :  { %254 = vmatpush.bf16.msra.mxu1 %v486_v7 }
  0x22   :  { %338 = vmatpush.bf16.msra.mxu2 %v495_v19 }
  0x24   :  { %170 = vmatpush.bf16.msra.mxu0 %v477_v8 }
  0x25   :  { %255 = vmatpush.bf16.msra.mxu1 %v485_v13 }
  0x26   :  { %339 = vmatpush.bf16.msra.mxu2 %v494_v20 }
  0x28   :  { %171 = vmatpush.bf16.msra.mxu0 %v476_v9 }
  0x29   :  { %256 = vmatpush.bf16.msra.mxu1 %v484_v14 }
  0x2a   :  { %340 = vmatpush.bf16.msra.mxu2 %v493_v29 }
  0x2c   :  { %172 = vmatpush.bf16.msra.mxu0 %v475_v10 }
  0x2d   :  { %257 = vmatpush.bf16.msra.mxu1 %v483_v15 }
  0x2e   :  { %341 = vmatpush.bf16.msra.mxu2 %v492_v30 }
  0x30   :  { %173 = vmatpush.bf16.msra.mxu0 %v474_v11 }
  0x31   :  { %258 = vmatpush.bf16.msra.mxu1 %v482_v16 }
  0x32   :  { %342 = vmatpush.bf16.msra.mxu2 %v491_v31 }
  0x33   :  { %174 = vmatmul.bf16.vlgmr.msra.gmra.mxu0 %v473_v12 }
  0x36   :  { %343 = vmatpush.bf16.msra.mxu2 %v490_v32 }
  0xb0   :  { %v175_v21 = vpop.f32.mrf.mxu0 }
  0xb1   :  { %v176_v23 = vadd.f32 %v507_v22, %v175_v21 }
  0xb3   :  { %v180_v26 = vmax.f32 %v176_v23, 0.0 }
  0xb8   :  { %v177_v24 = vpop.f32.mrf.mxu0 }
  0xb9   :  { %v178_v25 = vadd.f32 %v507_v22, %v177_v24 }
  0xbb   :  { %v181_v27 = vmax.f32 %v178_v25, 0.0 }
  0xbd   :  { %v182_v28 = vpack.c.bf16 %v181_v27, %v180_v26 }
  0xbf   :  { %259 = vmatmul.bf16.vlgmr.msra.gmra.mxu1 %v182_v28 }
 0x13c   :  { %v260_v33 = vpop.f32.mrf.mxu1 }
 0x13d   :  { %v261_v35 = vadd.f32 %v508_v34, %v260_v33 }
 0x13f   :  { %v265_v38 = vmax.f32 %v261_v35, 0.0 }
 0x144   :  { %v262_v36 = vpop.f32.mrf.mxu1 }
 0x145   :  { %v263_v37 = vadd.f32 %v508_v34, %v262_v36 }
 0x147   :  { %v266_v39 = vmax.f32 %v263_v37, 0.0 }
 0x149   :  { %v267_v40 = vpack.c.bf16 %v266_v39, %v265_v38 }
 0x14b   :  { %344 = vmatmul.bf16.vlgmr.msra.gmra.mxu2 %v267_v40 }
 0x1ce   :  { %v345_v42 = vpop.f32.mrf.mxu2 }
 0x1cf   :  { %v346_v43 = vadd.f32 %v509_v41, %v345_v42 }
 0x1d1   :  { %350 = vst [vmem:[#allocation10] sm:$0xff] %v346_v43 }
 0x1d6   :  { %v347_v44 = vpop.f32.mrf.mxu2 }
 0x1d7   :  { %v348_v45 = vadd.f32 %v509_v41, %v347_v44 }
 0x1d9   :  { %351 = vst [vmem:[#allocation10 + $0x8] sm:$0xff] %v348_v45 }
 0x1da   :  { %364 = dma.vmem_to_hbm [thread:$0]  %s357_s25, 256, %s359_s4, [#allocation4], %s645_s28, %s645_s28, %s646_s29  }
 0x1db   :  { %636 = dma.done.wait [#allocation4], 256  }
 0x1dc   :  { %637 = vsyncadd [#allocation4], 4294967040 }
 0x1dd   :  { %369 = vsyncpa [#allocation3], 1 }
 0x1de   :  { %370 = vsyncpa [#allocation6], 1 }
 0x1df   :  { %371 = vsyncpa [#allocation9], 1 }
 0x1e0   :  { %372 = vsyncpa [#allocation4], 1 }

// kernel: tpu_custom_call.1
= control target key start
LH: loop header
LB: loop body
LE: loop exit
PB: predicated region body
PF: predicated region fallthrough
CT: control target
= control target key end

     0   :  { %12 = vsyncpa [#allocation3], 0  ;;  %s711_s0 = inlined_call_operand.hbm [shape: bf16[16,128], index: 0, kind: input, shape index: {}]   ;;  %s712_s1 = inlined_call_operand.hbm [shape: bf16[128,128], index: 1, kind: input, shape index: {}]   ;;  %s713_s2 = inlined_call_operand.vmem [shape: f32[1,128], index: 2, kind: input, shape index: {}]   ;;  %s714_s3 = inlined_call_operand.hbm [shape: bf16[128,128], index: 3, kind: input, shape index: {}]   ;;  %s715_s4 = inlined_call_operand.vmem [shape: f32[1,128], index: 4, kind: input, shape index: {}]   ;;  %s716_s5 = inlined_call_operand.hbm [shape: bf16[128,128], index: 5, kind: input, shape index: {}]   ;;  %s717_s6 = inlined_call_operand.vmem [shape: f32[1,128], index: 6, kind: input, shape index: {}]   ;;  %s718_s7 = inlined_call_operand.hbm [shape: f32[16,128], index: 7, kind: output, shape index: {}]  }
   0x1   :  { %13 = vsyncpa [#allocation6], 0 }
   0x2   :  { %14 = vsyncpa [#allocation9], 0 }
   0x3   :  { %15 = vsyncpa [#allocation4], 0  ;;  %s33_s26 = sshll.u32 %s712_s1, 4  ;;  %s638_s27 = smov [#allocation5]   ;;  %s34_s26 = int_to_ptr.hbm [resolvable:$true] %s33_s26 }
   0x4   :  { %s35_s28 = sshll.u32 %s638_s27, 4  ;;  %s20_s8 = sshll.u32 %s711_s0, 4  ;;  %s36_s28 = int_to_ptr.vmem [resolvable:$true] %s35_s28  ;;  %s21_s8 = int_to_ptr.hbm [resolvable:$true] %s20_s8 }
   0x5   :  { %s639_s9 = smov 64   ;;  %s640_s10 = smov 4  }
   0x6   :  { %41 = dma.hbm_to_vmem [thread:$0]  %s34_s26, 1024, %s36_s28, [#allocation6], %s639_s9, %s639_s9, %s640_s10  }
   0x7   :  { %s641_s11 = smov [#allocation2]   ;;  %s48_s15 = sshll.u32 %s714_s3, 4  ;;  %s49_s15 = int_to_ptr.hbm [resolvable:$true] %s48_s15 }
   0x8   :  { %s22_s12 = sshll.u32 %s641_s11, 4  ;;  %s63_s17 = sshll.u32 %s716_s5, 4  ;;  %s23_s12 = int_to_ptr.vmem [resolvable:$true] %s22_s12  ;;  %s64_s17 = int_to_ptr.hbm [resolvable:$true] %s63_s17 }
   0x9   :  { %28 = dma.hbm_to_vmem [thread:$0]  %s21_s8, 128, %s23_s12, [#allocation3], %s639_s9, %s639_s9, %s640_s10  }
   0xa   :  { %s642_s18 = smov [#allocation7]   ;;  %s643_s0 = smov [#allocation8]  }
   0xb   :  { %s50_s19 = sshll.u32 %s642_s18, 4  ;;  %s65_s20 = sshll.u32 %s643_s0, 4  ;;  %s51_s19 = int_to_ptr.vmem [resolvable:$true] %s50_s19  ;;  %s66_s20 = int_to_ptr.vmem [resolvable:$true] %s65_s20 }
   0xc   :  { %56 = dma.hbm_to_vmem [thread:$0]  %s49_s15, 1024, %s51_s19, [#allocation6], %s639_s9, %s639_s9, %s640_s10  }
   0xd   :  { %71 = dma.hbm_to_vmem [thread:$0]  %s64_s17, 1024, %s66_s20, [#allocation9], %s639_s9, %s639_s9, %s640_s10  }
   0xe   :  { %630 = dma.done.wait [#allocation3], 128  }
   0xf   :  { %631 = vsyncadd [#allocation3], 4294967168 }
  0x10   :  { %632 = dma.done.wait [#allocation6], 2048  }
  0x11   :  { %633 = vsyncadd [#allocation6], 4294965248 }
  0x12   :  { %634 = dma.done.wait [#allocation9], 1024  }
  0x13   :  { %635 = vsyncadd [#allocation9], 4294966272  ;;  %v481_v0 = vld [vmem:[#allocation5 + $0x38] sm:$0xff]  ;;  %v480_v1 = vld [vmem:[#allocation5 + $0x30] sm:$0xff]  ;;  %s644_s24 = smov [#allocation10]   ;;  %s645_s28 = smov 128  }
  0x14   :  { %166 = vmatpush.bf16.msra.mxu0 %v481_v0  ;;  %v489_v2 = vld [vmem:[#allocation7 + $0x38] sm:$0xff]  ;;  %v488_v3 = vld [vmem:[#allocation7 + $0x30] sm:$0xff]  ;;  %v479_v4 = vld [vmem:[#allocation5 + $0x28] sm:$0xff]  ;;  %s356_s25 = sshll.u32 %s644_s24, 4  ;;  %s646_s29 = smov 8   ;;  %s357_s25 = int_to_ptr.vmem [resolvable:$true] %s356_s25 }
  0x15   :  { %251 = vmatpush.bf16.msra.mxu1 %v489_v2  ;;  %v487_v5 = vld [vmem:[#allocation7 + $0x28] sm:$0xff]  ;;  %v478_v6 = vld [vmem:[#allocation5 + $0x20] sm:$0xff]  ;;  %v477_v8 = vld [vmem:[#allocation5 + $0x18] sm:$0xff] }
  0x16   :  { %v486_v7 = vld [vmem:[#allocation7 + $0x20] sm:$0xff]  ;;  %v476_v9 = vld [vmem:[#allocation5 + $0x10] sm:$0xff]  ;;  %v475_v10 = vld [vmem:[#allocation5 + $0x8] sm:$0xff] }
  0x17   :  { %v474_v11 = vld [vmem:[#allocation5] sm:$0xff]  ;;  %v473_v12 = vld [vmem:[#allocation2] sm:$0xff]  ;;  %v484_v14 = vld [vmem:[#allocation7 + $0x10] sm:$0xff] }
  0x18   :  { %167 = vmatpush.bf16.msra.mxu0 %v480_v1  ;;  %v485_v13 = vld [vmem:[#allocation7 + $0x18] sm:$0xff]  ;;  %v483_v15 = vld [vmem:[#allocation7 + $0x8] sm:$0xff]  ;;  %v482_v16 = vld [vmem:[#allocation7] sm:$0xff] }
  0x19   :  { %252 = vmatpush.bf16.msra.mxu1 %v488_v3  ;;  %v497_v17 = vld [vmem:[#allocation8 + $0x38] sm:$0xff]  ;;  %v496_v18 = vld [vmem:[#allocation8 + $0x30] sm:$0xff]  ;;  %v495_v19 = vld [vmem:[#allocation8 + $0x28] sm:$0xff] }
  0x1a   :  { %336 = vmatpush.bf16.msra.mxu2 %v497_v17  ;;  %v494_v20 = vld [vmem:[#allocation8 + $0x20] sm:$0xff]  ;;  %v507_v22 = vld [vmem:[%s713_s2] ss:$0 sm:$0xff]  ;;  %v492_v30 = vld [vmem:[#allocation8 + $0x10] sm:$0xff] }
  0x1b   :  { %v493_v29 = vld [vmem:[#allocation8 + $0x18] sm:$0xff]  ;;  %v491_v31 = vld [vmem:[#allocation8 + $0x8] sm:$0xff]  ;;  %v490_v32 = vld [vmem:[#allocation8] sm:$0xff] }
  0x1c   :  { %168 = vmatpush.bf16.msra.mxu0 %v479_v4  ;;  %v508_v34 = vld [vmem:[%s715_s4] ss:$0 sm:$0xff]  ;;  %s358_s4 = sshll.u32 %s718_s7, 4  ;;  %s359_s4 = int_to_ptr.hbm [resolvable:$true] %s358_s4 }
  0x1d   :  { %253 = vmatpush.bf16.msra.mxu1 %v487_v5  ;;  %v509_v41 = vld [vmem:[%s717_s6] ss:$0 sm:$0xff] }
  0x1e   :  { %337 = vmatpush.bf16.msra.mxu2 %v496_v18 }
  0x20   :  { %169 = vmatpush.bf16.msra.mxu0 %v478_v6 }
  0x21   :  { %254 = vmatpush.bf16.msra.mxu1 %v486_v7 }
  0x22   :  { %338 = vmatpush.bf16.msra.mxu2 %v495_v19 }
  0x24   :  { %170 = vmatpush.bf16.msra.mxu0 %v477_v8 }
  0x25   :  { %255 = vmatpush.bf16.msra.mxu1 %v485_v13 }
  0x26   :  { %339 = vmatpush.bf16.msra.mxu2 %v494_v20 }
  0x28   :  { %171 = vmatpush.bf16.msra.mxu0 %v476_v9 }
  0x29   :  { %256 = vmatpush.bf16.msra.mxu1 %v484_v14 }
  0x2a   :  { %340 = vmatpush.bf16.msra.mxu2 %v493_v29 }
  0x2c   :  { %172 = vmatpush.bf16.msra.mxu0 %v475_v10 }
  0x2d   :  { %257 = vmatpush.bf16.msra.mxu1 %v483_v15 }
  0x2e   :  { %341 = vmatpush.bf16.msra.mxu2 %v492_v30 }
  0x30   :  { %173 = vmatpush.bf16.msra.mxu0 %v474_v11 }
  0x31   :  { %258 = vmatpush.bf16.msra.mxu1 %v482_v16 }
  0x32   :  { %342 = vmatpush.bf16.msra.mxu2 %v491_v31 }
  0x33   :  { %174 = vmatmul.bf16.vlgmr.msra.gmra.mxu0 %v473_v12 }
  0x36   :  { %343 = vmatpush.bf16.msra.mxu2 %v490_v32 }
  0xb0   :  { %v175_v21 = vpop.f32.mrf.mxu0 }
  0xb1   :  { %v176_v23 = vadd.f32 %v507_v22, %v175_v21 }
  0xb3   :  { %v180_v26 = vmax.f32 %v176_v23, 0.0 }
  0xb8   :  { %v177_v24 = vpop.f32.mrf.mxu0 }
  0xb9   :  { %v178_v25 = vadd.f32 %v507_v22, %v177_v24 }
  0xbb   :  { %v181_v27 = vmax.f32 %v178_v25, 0.0 }
  0xbd   :  { %v182_v28 = vpack.c.bf16 %v181_v27, %v180_v26 }
  0xbf   :  { %259 = vmatmul.bf16.vlgmr.msra.gmra.mxu1 %v182_v28 }
 0x13c   :  { %v260_v33 = vpop.f32.mrf.mxu1 }
 0x13d   :  { %v261_v35 = vadd.f32 %v508_v34, %v260_v33 }
 0x13f   :  { %v265_v38 = vmax.f32 %v261_v35, 0.0 }
 0x144   :  { %v262_v36 = vpop.f32.mrf.mxu1 }
 0x145   :  { %v263_v37 = vadd.f32 %v508_v34, %v262_v36 }
 0x147   :  { %v266_v39 = vmax.f32 %v263_v37, 0.0 }
 0x149   :  { %v267_v40 = vpack.c.bf16 %v266_v39, %v265_v38 }
 0x14b   :  { %344 = vmatmul.bf16.vlgmr.msra.gmra.mxu2 %v267_v40 }
 0x1ce   :  { %v345_v42 = vpop.f32.mrf.mxu2 }
 0x1cf   :  { %v346_v43 = vadd.f32 %v509_v41, %v345_v42 }
 0x1d1   :  { %350 = vst [vmem:[#allocation10] sm:$0xff] %v346_v43 }
 0x1d6   :  { %v347_v44 = vpop.f32.mrf.mxu2 }
 0x1d7   :  { %v348_v45 = vadd.f32 %v509_v41, %v347_v44 }
 0x1d9   :  { %351 = vst [vmem:[#allocation10 + $0x8] sm:$0xff] %v348_v45 }
 0x1da   :  { %364 = dma.vmem_to_hbm [thread:$0]  %s357_s25, 256, %s359_s4, [#allocation4], %s645_s28, %s645_s28, %s646_s29  }
 0x1db   :  { %636 = dma.done.wait [#allocation4], 256  }
 0x1dc   :  { %637 = vsyncadd [#allocation4], 4294967040 }
 0x1dd   :  { %369 = vsyncpa [#allocation3], 1 }
 0x1de   :  { %370 = vsyncpa [#allocation6], 1 }
 0x1df   :  { %371 = vsyncpa [#allocation9], 1 }
 0x1e0   :  { %372 = vsyncpa [#allocation4], 1 }

</bundles_post_ra>
